<compile_context>
chip_gen: v5e
topology: v5e:2x2
jax: 0.10.0
libtpu: 0.0.40
codegen_flags: <defaults>
</compile_context>

<pallas_src>
import jax
import jax.numpy as jnp
from jax.experimental import pallas as pl
from jax.experimental.pallas import tpu as pltpu


# ----------------------------------------------------------------------------
# Pass 1: edge MLP  m = relu([src || e || dst] @ W_e + b_e)
# ----------------------------------------------------------------------------
def edge_mlp_kernel(xc_ref, we_ref, be_ref, m_ref):
    h = jnp.dot(xc_ref[...], we_ref[...], preferred_element_type=jnp.float32)
    m_ref[...] = jnp.maximum(h + be_ref[...], 0.0).astype(m_ref.dtype)


# ----------------------------------------------------------------------------
# Pass 2: segment aggregation (mean) + node MLP
# ----------------------------------------------------------------------------
def aggregate_node_kernel(blk_tbl_ref, nblk_ref,            # scalar prefetch
                          dst_ref, m_ref,                   # edge-block inputs
                          inv_ref, vd_ref,                  # node-tiled inputs
                          wvn_ref, wvd_ref, bv_ref,         # node-MLP params
                          out_ref,                          # output tile
                          acc_ref):                         # VMEM scratch
    i = pl.program_id(0)
    k = pl.program_id(1)

    @pl.when(k == 0)
    def _init():
        acc_ref[...] = jnp.zeros_like(acc_ref)

    # Only process edge blocks belonging to this node tile's dst-sorted
    # segment; other steps are skipped (their index_map is clamped so no new
    # DMA is issued either).
    @pl.when(k < nblk_ref[i])
    def _accumulate():
        tn = out_ref.shape[0]
        te = m_ref.shape[0]
        node_ids = i * tn + jax.lax.broadcasted_iota(jnp.int32, (tn, te), 0)
        onehot = (node_ids == dst_ref[...]).astype(jnp.bfloat16)   # (TN, TE)
        acc_ref[...] += jnp.dot(onehot, m_ref[...],
                                preferred_element_type=jnp.float32)

    @pl.when(k == pl.num_programs(1) - 1)
    def _finalize():
        neigh = acc_ref[...] * inv_ref[...]                  # mean (f32)
        h = jnp.dot(neigh.astype(jnp.bfloat16), wvn_ref[...],
                    preferred_element_type=jnp.float32)
        h += jnp.dot(vd_ref[...], wvd_ref[...],
                     preferred_element_type=jnp.float32)
        out_ref[...] = jnp.maximum(h + bv_ref[...], 0.0)     # lane-dense store


# ----------------------------------------------------------------------------
# Wrapper
# ----------------------------------------------------------------------------
def _round_up(x, m):
    return ((x + m - 1) // m) * m


def _mxu_align(d):
    # 128 lanes minimum; 256-align only when the true dim already exceeds one
    # 128-lane group (v6e/v7x 2x256 MXU); v5e (4x128) is native at 128.
    return 128 if d <= 128 else _round_up(d, 256)


def _pad2(x, rows, cols, dtype):
    x = x.astype(dtype)
    return jnp.pad(x, ((0, rows - x.shape[0]), (0, cols - x.shape[1])))


def node_gn_block(src_feats, dst_feats, edge_feats, src_idx, dst_idx, params,
                  *, tile_n=256, tile_e=1024):
    """Pallas-backed NodeGNBlock forward (aggregator='mean', activation='relu')."""
    we, be, wvn, wvd, bv = params
    n_dst, f_dst = dst_feats.shape
    f_src = src_feats.shape[1]
    n_edge, f_edge = edge_feats.shape
    out = we.shape[1]
    k_in = f_src + f_edge + f_dst

    # MXU-aligned padded widths.
    k_p = _mxu_align(k_in)
    fd_p = _mxu_align(f_dst)
    out_p = _mxu_align(out)

    # Node tiling ("parallel" axis). Halve tn so grid[0] >= 2 when possible
    # (feeds both v7x TensorCores); never below the (8, .) sublane minimum.
    tn = min(tile_n, _round_up(n_dst, 8))
    while _round_up(n_dst, tn) // tn < 2 and tn > 8:
        tn = _round_up(tn // 2, 8)
    n_pad = _round_up(n_dst, tn)
    n_tiles = n_pad // tn

    # Edge tiling (reduction axis, last in the grid).
    te = min(tile_e, _round_up(n_edge, 128))
    e_pad = _round_up(n_edge, te)
    e_blocks = e_pad // te

    cdt = jnp.bfloat16  # MXU input dtype; accumulation stays f32.

    # ---- wrapper glue (plain JAX): sort edges by dst, gather endpoints, pad.
    # TODO(synk): endpoint gather / sort could move on-chip for huge graphs;
    # kept as wrapper glue (no rectangular BlockSpec form for scatter/gather).
    src_idx = src_idx.astype(jnp.int32)
    dst_idx = dst_idx.astype(jnp.int32)
    perm = jnp.argsort(dst_idx)
    dst_sorted = dst_idx[perm]
    src_sorted = src_idx[perm]
    edge_sorted = edge_feats[perm]

    xc = jnp.concatenate(
        [src_feats[src_sorted], edge_sorted, dst_feats[dst_sorted]], axis=1)
    xc = _pad2(xc, e_pad, k_p, cdt)

    we_p = _pad2(we, k_p, out_p, cdt)
    be_p = _pad2(be.reshape(1, -1), 1, out_p, jnp.float32)
    vd = _pad2(dst_feats, n_pad, fd_p, cdt)
    wvn_p = _pad2(wvn, out_p, out_p, cdt)
    wvd_p = _pad2(wvd, fd_p, out_p, cdt)
    bv_p = _pad2(bv.reshape(1, -1), 1, out_p, jnp.float32)

    # Padded edges get dst = -1 so they never match any node row.
    dst_pad = jnp.full((1, e_pad), -1, jnp.int32).at[0, :n_edge].set(dst_sorted)

    # Degree hoisted out of the kernel: 1/deg per dst node (isolated -> 1, but
    # their accumulated sum is 0 so neigh stays 0, matching the reference).
    cnt = jnp.zeros((n_pad, 1), jnp.float32).at[dst_idx].add(1.0)
    inv_deg = 1.0 / jnp.maximum(cnt, 1.0)

    # CSR-style block schedule: edge-block range per node tile.
    bounds = jnp.arange(n_tiles + 1, dtype=jnp.int32) * tn
    rows = jnp.searchsorted(dst_sorted, bounds, side='left').astype(jnp.int32)
    row_start, row_end = rows[:-1], rows[1:]
    blk_start = row_start // te
    blk_end = (row_end + te - 1) // te
    nblk = jnp.maximum(blk_end - blk_start, 0).astype(jnp.int32)
    last_blk = jnp.clip(blk_start + jnp.maximum(nblk - 1, 0), 0, e_blocks - 1)
    k_iota = jnp.arange(e_blocks, dtype=jnp.int32)[None, :]
    blk_tbl = jnp.clip(jnp.minimum(blk_start[:, None] + k_iota,
                                   last_blk[:, None]),
                       0, e_blocks - 1).astype(jnp.int32)

    # ---------------- Pass 1: edge messages (computed once per edge tile) ----
    m = pl.pallas_call(
        edge_mlp_kernel,
        out_shape=jax.ShapeDtypeStruct((e_pad, out_p), cdt),
        grid_spec=pltpu.PrefetchScalarGridSpec(
            num_scalar_prefetch=0,
            grid=(e_blocks,),
            in_specs=[
                pl.BlockSpec((te, k_p), lambda j: (j, 0)),     # [src||e||dst]
                pl.BlockSpec((k_p, out_p), lambda j: (0, 0)),  # W_e
                pl.BlockSpec((1, out_p), lambda j: (0, 0)),    # b_e
            ],
            out_specs=pl.BlockSpec((te, out_p), lambda j: (j, 0)),
        ),
        compiler_params=pltpu.CompilerParams(
            dimension_semantics=("parallel",),
            vmem_limit_bytes=32 * 1024 * 1024,
        ),
        cost_estimate=pl.CostEstimate(
            flops=2 * e_pad * k_p * out_p,
            transcendentals=0,
            bytes_accessed=(xc.size * 2 + we_p.size * 2 + be_p.size * 4
                            + e_pad * out_p * 2)),
    )(xc, we_p, be_p)

    # ---------------- Pass 2: segment aggregation + node MLP -----------------
    node_rows = lambda i, k, *_: (i, 0)
    const_blk = lambda i, k, *_: (0, 0)
    m_block = lambda i, k, bt, nb: (bt[i, k], 0)
    dst_block = lambda i, k, bt, nb: (0, bt[i, k])

    agg_flops = (2 * tn * out_p * (e_pad + n_tiles * te)
                 + 2 * n_pad * (out_p + fd_p) * out_p)
    agg_bytes = ((e_pad + n_tiles * te) * out_p * 2 + e_pad * 4
                 + vd.size * 2 + inv_deg.size * 4
                 + (wvn_p.size + wvd_p.size) * 2 + bv_p.size * 4
                 + n_pad * out_p * 4)

    # TODO(synk): on v5e, if profiling shows exposed DMA, add
    # pipeline_mode=pl.Buffered(3) on the m / dst edge-tiled specs.
    out_padded = pl.pallas_call(
        aggregate_node_kernel,
        out_shape=jax.ShapeDtypeStruct((n_pad, out_p), jnp.float32),
        grid_spec=pltpu.PrefetchScalarGridSpec(
            num_scalar_prefetch=2,                 # blk_tbl, nblk
            grid=(n_tiles, e_blocks),
            in_specs=[
                pl.BlockSpec((1, te), dst_block),         # sorted dst indices
                pl.BlockSpec((te, out_p), m_block),       # edge messages m
                pl.BlockSpec((tn, 1), node_rows),         # 1/deg
                pl.BlockSpec((tn, fd_p), node_rows),      # dst node feats
                pl.BlockSpec((out_p, out_p), const_blk),  # W_v (neigh block)
                pl.BlockSpec((fd_p, out_p), const_blk),   # W_v (dst block)
                pl.BlockSpec((1, out_p), const_blk),      # b_v
            ],
            out_specs=pl.BlockSpec((tn, out_p), node_rows),
            scratch_shapes=[
                pltpu.VMEM((tn, out_p), jnp.float32),     # neigh-sum accumulator
            ],
        ),
        compiler_params=pltpu.CompilerParams(
            dimension_semantics=("parallel", "arbitrary"),
            vmem_limit_bytes=32 * 1024 * 1024,
        ),
        cost_estimate=pl.CostEstimate(
            flops=agg_flops, transcendentals=0, bytes_accessed=agg_bytes),
    )(blk_tbl, nblk, dst_pad, m, inv_deg, vd, wvn_p, wvd_p, bv_p)

    # Padded rows/cols hold relu(b_v)-style junk; slice them off here.
    return out_padded[:n_dst, :out]


# ----------------------------------------------------------------------------
# Pure-JAX reference mirroring the PyTorch forward pass (f32)
# ----------------------------------------------------------------------------
def node_gn_reference(src_feats, dst_feats, edge_feats, src_idx, dst_idx, params):
    we, be, wvn, wvd, bv = params
    n_dst = dst_feats.shape[0]
    x = jnp.concatenate([src_feats[src_idx], edge_feats, dst_feats[dst_idx]], axis=1)
    m = jnp.maximum(x @ we + be, 0.0)
    s = jnp.zeros((n_dst, m.shape[1]), jnp.float32).at[dst_idx].add(m)
    cnt = jnp.zeros((n_dst, 1), jnp.float32).at[dst_idx].add(1.0)
    neigh = s / jnp.maximum(cnt, 1.0)
    return jnp.maximum(neigh @ wvn + dst_feats @ wvd + bv, 0.0)


if __name__ == "__main__":
    # Small synthetic graph: 8 nodes, 16 edges.
    N_NODES, N_EDGES = 8, 16
    IN_NODE, IN_EDGE, OUT_NODE = 4, 4, 8

    key = jax.random.PRNGKey(0)
    ks = jax.random.split(key, 9)
    node_feats = jax.random.normal(ks[0], (N_NODES, IN_NODE), jnp.float32)
    edge_feats = jax.random.normal(ks[1], (N_EDGES, IN_EDGE), jnp.float32)
    src_idx = jax.random.randint(ks[2], (N_EDGES,), 0, N_NODES)
    dst_idx = jax.random.randint(ks[3], (N_EDGES,), 0, N_NODES)

    # Parameters: f_e Linear(in_src+in_edge+in_dst -> out); f_v split into the
    # neigh block [out, out] and the dst block [in_dst, out].
    we = 0.1 * jax.random.normal(ks[4], (IN_NODE + IN_EDGE + IN_NODE, OUT_NODE), jnp.float32)
    be = 0.1 * jax.random.normal(ks[5], (1, OUT_NODE), jnp.float32)
    wvn = 0.1 * jax.random.normal(ks[6], (OUT_NODE, OUT_NODE), jnp.float32)
    wvd = 0.1 * jax.random.normal(ks[7], (IN_NODE, OUT_NODE), jnp.float32)
    bv = 0.1 * jax.random.normal(ks[8], (1, OUT_NODE), jnp.float32)
    params = (we, be, wvn, wvd, bv)

    out = node_gn_block(node_feats, node_feats, edge_feats, src_idx, dst_idx, params)
    out = jax.block_until_ready(out)

    ref = node_gn_reference(node_feats, node_feats, edge_feats, src_idx, dst_idx, params)
    assert out.shape == (N_NODES, OUT_NODE)
    # bf16 edge messages / MXU inputs with f32 accumulation vs f32 reference.
    assert jnp.allclose(out, ref, atol=2e-2, rtol=2e-2), "mismatch vs reference"

    print("KERNEL_OK")
</pallas_src>

<mosaic_0001>
module attributes {stable_mosaic.version = 11 : i64} {
  func.func @edge_mlp_kernel(%arg0: i32, %arg1: memref<128x128xbf16, #tpu.memory_space<vmem>>, %arg2: memref<128x128xbf16, #tpu.memory_space<vmem>>, %arg3: memref<1x128xf32, #tpu.memory_space<vmem>>, %arg4: memref<128x128xbf16, #tpu.memory_space<vmem>>) attributes {dimension_semantics = [#tpu.dimension_semantics<parallel>], iteration_bounds = array<i64: 1>, scalar_prefetch = 0 : i64, scratch_operands = 0 : i64, tpu.core_type = #tpu.core_type<tc>, window_params = [{transform_indices = @transform_0, window_bounds = array<i64: 128, 128>}, {pipeline_mode = #tpu.pipeline_mode<synchronous>, transform_indices = @transform_1, window_bounds = array<i64: 128, 128>}, {pipeline_mode = #tpu.pipeline_mode<synchronous>, transform_indices = @transform_2, window_bounds = array<i64: 1, 128>}, {transform_indices = @transform_3, window_bounds = array<i64: 128, 128>}]} {
    %c0 = arith.constant 0 : index
    %c0_0 = arith.constant 0 : index
    %0 = vector.load %arg1[%c0, %c0_0] : memref<128x128xbf16, #tpu.memory_space<vmem>>, vector<128x128xbf16>
    %c0_1 = arith.constant 0 : index
    %c0_2 = arith.constant 0 : index
    %1 = vector.load %arg2[%c0_1, %c0_2] : memref<128x128xbf16, #tpu.memory_space<vmem>>, vector<128x128xbf16>
    %cst = arith.constant dense<0.000000e+00> : vector<128x128xf32>
    %2 = tpu.matmul %0, %1, %cst {dimension_numbers = #tpu.dot_dimension_numbers<[1], [0], [0], [1], [0, 0, 1, 1], [], []>} : vector<128x128xbf16>, vector<128x128xbf16>, vector<128x128xf32> -> vector<128x128xf32>
    %c0_3 = arith.constant 0 : index
    %c0_4 = arith.constant 0 : index
    %3 = vector.load %arg3[%c0_3, %c0_4] : memref<1x128xf32, #tpu.memory_space<vmem>>, vector<1x128xf32>
    %4 = vector.broadcast %3 : vector<1x128xf32> to vector<128x128xf32>
    %5 = arith.addf %2, %4 : vector<128x128xf32>
    %cst_5 = arith.constant 0.000000e+00 : f32
    %6 = vector.broadcast %cst_5 : f32 to vector<128x128xf32>
    %7 = arith.maximumf %5, %6 : vector<128x128xf32>
    %8 = arith.truncf %7 : vector<128x128xf32> to vector<128x128xbf16>
    %c0_6 = arith.constant 0 : index
    %c0_7 = arith.constant 0 : index
    %9 = vector.load %arg4[%c0_6, %c0_7] : memref<128x128xbf16, #tpu.memory_space<vmem>>, vector<128x128xbf16>
    tpu.vector_store %arg4[%c0_6, %c0_7], %8 {strides = array<i32>} : memref<128x128xbf16, #tpu.memory_space<vmem>>, vector<128x128xbf16>,
    return
  }
  func.func @transform_0(%arg0: i32) -> (i32, i32) {
    %c0_i32 = arith.constant 0 : i32
    %c0_i32_0 = arith.constant 0 : i32
    return %arg0, %c0_i32 : i32, i32
  }
  func.func @transform_1(%arg0: i32) -> (i32, i32) {
    %c0_i32 = arith.constant 0 : i32
    %c0_i32_0 = arith.constant 0 : i32
    %c0_i32_1 = arith.constant 0 : i32
    return %c0_i32, %c0_i32_0 : i32, i32
  }
  func.func @transform_2(%arg0: i32) -> (i32, i32) {
    %c0_i32 = arith.constant 0 : i32
    %c0_i32_0 = arith.constant 0 : i32
    %c0_i32_1 = arith.constant 0 : i32
    return %c0_i32, %c0_i32_0 : i32, i32
  }
  func.func @transform_3(%arg0: i32) -> (i32, i32) {
    %c0_i32 = arith.constant 0 : i32
    %c0_i32_0 = arith.constant 0 : i32
    return %arg0, %c0_i32 : i32, i32
  }
}

</mosaic_0001>

<bundles_post_ra>
// kernel: tpu_custom_call.1
= control target key start
LH: loop header
LB: loop body
LE: loop exit
PB: predicated region body
PF: predicated region fallthrough
CT: control target
= control target key end

     0   :  { %8 = vsyncpa [#allocation3], 0  ;;  %s577_s0 = inlined_call_operand.hbm [shape: bf16[128,128], index: 0, kind: input, shape index: {}]   ;;  %s578_s1 = inlined_call_operand.hbm [shape: bf16[128,128], index: 1, kind: input, shape index: {}]   ;;  %s579_s2 = inlined_call_operand.vmem [shape: f32[1,128], index: 2, kind: input, shape index: {}]   ;;  %s580_s3 = inlined_call_operand.hbm [shape: bf16[128,128], index: 3, kind: output, shape index: {}]  }
   0x1   :  { %9 = vsyncpa [#allocation6], 0 }
   0x2   :  { %10 = vsyncpa [#allocation4], 0  ;;  %s15_s14 = sshll.u32 %s577_s0, 4  ;;  %s531_s15 = smov [#allocation2]   ;;  %s16_s14 = int_to_ptr.hbm [resolvable:$true] %s15_s14 }
   0x3   :  { %s17_s16 = sshll.u32 %s531_s15, 4  ;;  %s28_s19 = sshll.u32 %s578_s1, 4  ;;  %s18_s16 = int_to_ptr.vmem [resolvable:$true] %s17_s16  ;;  %s29_s19 = int_to_ptr.hbm [resolvable:$true] %s28_s19 }
   0x4   :  { %s532_s20 = smov 64   ;;  %s533_s21 = smov 4  }
   0x5   :  { %23 = dma.hbm_to_vmem [thread:$0]  %s16_s14, 1024, %s18_s16, [#allocation3], %s532_s20, %s532_s20, %s533_s21  }
   0x6   :  { %s534_s22 = smov [#allocation5]  }
   0x7   :  { %s30_s23 = sshll.u32 %s534_s22, 4  ;;  %s31_s23 = int_to_ptr.vmem [resolvable:$true] %s30_s23 }
   0x8   :  { %36 = dma.hbm_to_vmem [thread:$0]  %s29_s19, 1024, %s31_s23, [#allocation6], %s532_s20, %s532_s20, %s533_s21  }
   0x9   :  { %525 = dma.done.wait [#allocation3], 1024  }
   0xa   :  { %526 = vsyncadd [#allocation3], 4294966272 }
   0xb   :  { %527 = dma.done.wait [#allocation6], 1024  }
   0xc   :  { %528 = vsyncadd [#allocation6], 4294966272  ;;  %v375_v0 = vld [vmem:[#allocation5 + $0x38] sm:$0xff]  ;;  %v374_v1 = vld [vmem:[#allocation5 + $0x30] sm:$0xff]  ;;  %s282_s27 = sshll.u32 %s580_s3, 4  ;;  %s283_s27 = int_to_ptr.hbm [resolvable:$true] %s282_s27 }
   0xd   :  { %179 = vmatpush.bf16.msra.mxu0 %v375_v0  ;;  %423 = vmatpush.bf16.msra.mxu1 %v375_v0  ;;  %v373_v2 = vld [vmem:[#allocation5 + $0x28] sm:$0xff]  ;;  %v372_v3 = vld [vmem:[#allocation5 + $0x20] sm:$0xff]  ;;  %v371_v4 = vld [vmem:[#allocation5 + $0x18] sm:$0xff] }
   0xe   :  { %424 = vmatpush.bf16.msra.mxu2 %v375_v0  ;;  %425 = vmatpush.bf16.msra.mxu3 %v375_v0  ;;  %v370_v5 = vld [vmem:[#allocation5 + $0x10] sm:$0xff]  ;;  %v369_v6 = vld [vmem:[#allocation5 + $0x8] sm:$0xff]  ;;  %v368_v7 = vld [vmem:[#allocation5] sm:$0xff] }
   0xf   :  { %v360_v8 = vld [vmem:[#allocation2] sm:$0xff]  ;;  %v362_v9 = vld [vmem:[#allocation2 + $0x10] sm:$0xff]  ;;  %v361_v12 = vld [vmem:[#allocation2 + $0x8] sm:$0xff] }
  0x10   :  { %v364_v10 = vld [vmem:[#allocation2 + $0x20] sm:$0xff]  ;;  %v366_v11 = vld [vmem:[#allocation2 + $0x30] sm:$0xff]  ;;  %v363_v13 = vld [vmem:[#allocation2 + $0x18] sm:$0xff] }
  0x11   :  { %180 = vmatpush.bf16.msra.mxu0 %v374_v1  ;;  %426 = vmatpush.bf16.msra.mxu1 %v374_v1  ;;  %v365_v14 = vld [vmem:[#allocation2 + $0x28] sm:$0xff]  ;;  %v367_v15 = vld [vmem:[#allocation2 + $0x38] sm:$0xff]  ;;  %v452_v18 = vld [vmem:[%s579_s2] ss:$0 sm:$0xff]  ;;  %s535_s2 = smov [#allocation7]  }
  0x12   :  { %427 = vmatpush.bf16.msra.mxu2 %v374_v1  ;;  %428 = vmatpush.bf16.msra.mxu3 %v374_v1  ;;  %s280_s24 = sshll.u32 %s535_s2, 4  ;;  %s281_s24 = int_to_ptr.vmem [resolvable:$true] %s280_s24 }
  0x15   :  { %181 = vmatpush.bf16.msra.mxu0 %v373_v2  ;;  %429 = vmatpush.bf16.msra.mxu1 %v373_v2 }
  0x16   :  { %430 = vmatpush.bf16.msra.mxu2 %v373_v2  ;;  %431 = vmatpush.bf16.msra.mxu3 %v373_v2 }
  0x19   :  { %182 = vmatpush.bf16.msra.mxu0 %v372_v3  ;;  %432 = vmatpush.bf16.msra.mxu1 %v372_v3 }
  0x1a   :  { %433 = vmatpush.bf16.msra.mxu2 %v372_v3  ;;  %434 = vmatpush.bf16.msra.mxu3 %v372_v3 }
  0x1d   :  { %183 = vmatpush.bf16.msra.mxu0 %v371_v4  ;;  %435 = vmatpush.bf16.msra.mxu1 %v371_v4 }
  0x1e   :  { %436 = vmatpush.bf16.msra.mxu2 %v371_v4  ;;  %437 = vmatpush.bf16.msra.mxu3 %v371_v4 }
  0x21   :  { %184 = vmatpush.bf16.msra.mxu0 %v370_v5  ;;  %438 = vmatpush.bf16.msra.mxu1 %v370_v5 }
  0x22   :  { %439 = vmatpush.bf16.msra.mxu2 %v370_v5  ;;  %440 = vmatpush.bf16.msra.mxu3 %v370_v5 }
  0x25   :  { %185 = vmatpush.bf16.msra.mxu0 %v369_v6  ;;  %441 = vmatpush.bf16.msra.mxu1 %v369_v6 }
  0x26   :  { %442 = vmatpush.bf16.msra.mxu2 %v369_v6  ;;  %443 = vmatpush.bf16.msra.mxu3 %v369_v6 }
  0x29   :  { %186 = vmatpush.bf16.msra.mxu0 %v368_v7  ;;  %444 = vmatpush.bf16.msra.mxu1 %v368_v7 }
  0x2a   :  { %445 = vmatpush.bf16.msra.mxu2 %v368_v7  ;;  %446 = vmatpush.bf16.msra.mxu3 %v368_v7 }
  0x2c   :  { %187 = vmatmul.bf16.vlgmr.msra.gmra.mxu0 %v360_v8  ;;  %197 = vmatmul.bf16.vlgmr.msra.gmra.mxu1 %v362_v9 }
  0x2d   :  { %207 = vmatmul.bf16.vlgmr.msra.gmra.mxu2 %v364_v10  ;;  %217 = vmatmul.bf16.vlgmr.msra.gmra.mxu3 %v366_v11 }
  0x3c   :  { %192 = vmatmul.bf16.gmra.mxu0 %v361_v12  ;;  %202 = vmatmul.bf16.gmra.mxu1 %v363_v13 }
  0x3d   :  { %212 = vmatmul.bf16.gmra.mxu2 %v365_v14  ;;  %222 = vmatmul.bf16.gmra.mxu3 %v367_v15 }
  0xa9   :  { %v188_v16 = vpop.f32.mrf.mxu0  ;;  %v198_v17 = vpop.f32.mrf.mxu1 }
  0xaa   :  { %v189_v19 = vadd.f32 %v452_v18, %v188_v16  ;;  %v199_v20 = vadd.f32 %v452_v18, %v198_v17 }
  0xac   :  { %v228_v27 = vmax.f32 %v189_v19, 0.0  ;;  %v232_v28 = vmax.f32 %v199_v20, 0.0 }
  0xb0   :  { %v208_v21 = vpop.f32.mrf.mxu2  ;;  %v218_v22 = vpop.f32.mrf.mxu3 }
  0xb1   :  { %v190_v23 = vpop.f32.mrf.mxu0  ;;  %v200_v24 = vpop.f32.mrf.mxu1  ;;  %v209_v33 = vadd.f32 %v452_v18, %v208_v21  ;;  %v219_v34 = vadd.f32 %v452_v18, %v218_v22 }
  0xb2   :  { %v191_v25 = vadd.f32 %v452_v18, %v190_v23  ;;  %v201_v26 = vadd.f32 %v452_v18, %v200_v24 }
  0xb3   :  { %v236_v41 = vmax.f32 %v209_v33, 0.0  ;;  %v240_v42 = vmax.f32 %v219_v34, 0.0 }
  0xb4   :  { %v229_v29 = vmax.f32 %v191_v25, 0.0  ;;  %v233_v30 = vmax.f32 %v201_v26, 0.0 }
  0xb6   :  { %v379_v31 = vpack.c.bf16 %v229_v29, %v228_v27  ;;  %v389_v32 = vpack.c.bf16 %v233_v30, %v232_v28 }
  0xb8   :  { %380 = vst [vmem:[#allocation7] sm:$0xff] %v379_v31   ;;  %v210_v35 = vpop.f32.mrf.mxu2  ;;  %v220_v36 = vpop.f32.mrf.mxu3 }
  0xb9   :  { %417 = vst [vmem:[#allocation7 + $0x10] sm:$0xff] %v389_v32   ;;  %v211_v37 = vadd.f32 %v452_v18, %v210_v35  ;;  %v221_v38 = vadd.f32 %v452_v18, %v220_v36  ;;  %v193_v39 = vpop.f32.mrf.mxu0  ;;  %v203_v40 = vpop.f32.mrf.mxu1 }
  0xba   :  { %v194_v47 = vadd.f32 %v452_v18, %v193_v39  ;;  %v204_v48 = vadd.f32 %v452_v18, %v203_v40 }
  0xbb   :  { %v237_v43 = vmax.f32 %v211_v37, 0.0  ;;  %v241_v44 = vmax.f32 %v221_v38, 0.0 }
  0xbc   :  { %v230_v55 = vmax.f32 %v194_v47, 0.0  ;;  %v234_v56 = vmax.f32 %v204_v48, 0.0 }
  0xbd   :  { %v399_v45 = vpack.c.bf16 %v237_v43, %v236_v41  ;;  %v409_v46 = vpack.c.bf16 %v241_v44, %v240_v42 }
  0xbf   :  { %419 = vst [vmem:[#allocation7 + $0x20] sm:$0xff] %v399_v45  }
  0xc0   :  { %421 = vst [vmem:[#allocation7 + $0x30] sm:$0xff] %v409_v46   ;;  %v213_v49 = vpop.f32.mrf.mxu2  ;;  %v223_v50 = vpop.f32.mrf.mxu3 }
  0xc1   :  { %v195_v51 = vpop.f32.mrf.mxu0  ;;  %v205_v52 = vpop.f32.mrf.mxu1  ;;  %v214_v61 = vadd.f32 %v452_v18, %v213_v49  ;;  %v224_v62 = vadd.f32 %v452_v18, %v223_v50 }
  0xc2   :  { %v196_v53 = vadd.f32 %v452_v18, %v195_v51  ;;  %v206_v54 = vadd.f32 %v452_v18, %v205_v52 }
  0xc3   :  { %v238_v3 = vmax.f32 %v214_v61, 0.0  ;;  %v242_v4 = vmax.f32 %v224_v62, 0.0 }
  0xc4   :  { %v231_v57 = vmax.f32 %v196_v53, 0.0  ;;  %v235_v58 = vmax.f32 %v206_v54, 0.0 }
  0xc6   :  { %v384_v59 = vpack.c.bf16 %v231_v57, %v230_v55  ;;  %v394_v60 = vpack.c.bf16 %v235_v58, %v234_v56 }
  0xc8   :  { %416 = vst [vmem:[#allocation7 + $0x8] sm:$0xff] %v384_v59   ;;  %v215_v63 = vpop.f32.mrf.mxu2  ;;  %v225_v0 = vpop.f32.mrf.mxu3 }
  0xc9   :  { %418 = vst [vmem:[#allocation7 + $0x18] sm:$0xff] %v394_v60   ;;  %v216_v1 = vadd.f32 %v452_v18, %v215_v63  ;;  %v226_v2 = vadd.f32 %v452_v18, %v225_v0 }
  0xcb   :  { %v239_v5 = vmax.f32 %v216_v1, 0.0  ;;  %v243_v6 = vmax.f32 %v226_v2, 0.0 }
  0xcd   :  { %v404_v7 = vpack.c.bf16 %v239_v5, %v238_v3  ;;  %v414_v8 = vpack.c.bf16 %v243_v6, %v242_v4 }
  0xcf   :  { %420 = vst [vmem:[#allocation7 + $0x28] sm:$0xff] %v404_v7  }
  0xd0   :  { %422 = vst [vmem:[#allocation7 + $0x38] sm:$0xff] %v414_v8  }
  0xd1   :  { %288 = dma.vmem_to_hbm [thread:$0]  %s281_s24, 1024, %s283_s27, [#allocation4], %s532_s20, %s532_s20, %s533_s21  }
  0xd2   :  { %529 = dma.done.wait [#allocation4], 1024  }
  0xd3   :  { %530 = vsyncadd [#allocation4], 4294966272 }
  0xd4   :  { %293 = vsyncpa [#allocation3], 1 }
  0xd5   :  { %294 = vsyncpa [#allocation6], 1 }
  0xd6   :  { %295 = vsyncpa [#allocation4], 1 }

</bundles_post_ra>
